<compile_context>
chip_gen: v5e
topology: v5e:2x2
jax: 0.10.0
libtpu: 0.0.40
codegen_flags: <defaults>
</compile_context>

<pallas_src>
import jax
import jax.numpy as jnp
from jax import lax
from jax.experimental import pallas as pl
from jax.experimental.pallas import tpu as pltpu


def _round_up(a, b):
    return (a + b - 1) // b * b


def _cdiv(a, b):
    return (a + b - 1) // b


def _balanced_tile(dim, max_tile, align):
    """Tile (multiple of `align`) + padded dim such that the tile divides the
    padded dim exactly and padding never exceeds one `align` granule per tile."""
    dim_a = _round_up(max(dim, 1), align)
    if dim_a <= max_tile:
        return dim_a, dim_a
    n_blocks = _cdiv(dim_a, max_tile)
    tile = _round_up(_cdiv(dim_a, n_blocks), align)
    return tile, tile * n_blocks


def _lora_linear_kernel(x_ref, wfc_ref, down_ref, wup_ref, b_ref, o_ref,
                        acc_ref):
    # x_ref   : (tm, tk)       activation tile               (compute dtype)
    # wfc_ref : (tn, tk)       W_fc tile, native (N, K) layout
    # down_ref: (tm, rank_p)   precomputed x @ W_down^T tile
    # wup_ref : (rank_p, tn)   lora_scale * W_up^T tile
    # b_ref   : (1, tn)        bias tile (f32)
    # o_ref   : (tm, tn)       output tile (written once, at the last K step)
    # acc_ref : (tm, tn) f32   VMEM accumulator
    k = pl.program_id(2)

    @pl.when(k == 0)
    def _():
        acc_ref[...] = jnp.zeros_like(acc_ref)

    # Frozen linear path: x @ W_fc^T, contracting the K (last) dim of both
    # operands so W_fc stays in its native (N, K) layout.
    acc_ref[...] += lax.dot_general(
        x_ref[...], wfc_ref[...],
        dimension_numbers=(((1,), (1,)), ((), ())),
        preferred_element_type=jnp.float32)

    @pl.when(k == pl.num_programs(2) - 1)
    def _():
        # LoRA up projection (scale already folded into wup) + bias epilogue,
        # applied exactly once per lane-dense output tile.
        lora = jnp.dot(down_ref[...], wup_ref[...],
                       preferred_element_type=jnp.float32)
        out = acc_ref[...] + lora + b_ref[...].astype(jnp.float32)
        o_ref[...] = out.astype(o_ref.dtype)


def monkeypatch_lora_linear_pallas(x, w_fc, b_fc, w_down, w_up, *,
                                   lora_scale=1.0,
                                   compute_dtype=None,
                                   tm_max=256, tn_max=512, tk_max=1024):
    """Forward pass of MonkeyPatchLoRALinear.

    x      : (..., in_features)
    w_fc   : (out_features, in_features)   -- self.fc.weight
    b_fc   : (out_features,) or None       -- self.fc.bias
    w_down : (rank, in_features)           -- self.fc_lora.down.weight
    w_up   : (out_features, rank)          -- self.fc_lora.up.weight
    returns: (..., out_features) in x.dtype
    """
    orig_dtype = x.dtype
    out_features, in_features = w_fc.shape
    rank = w_down.shape[0]
    if rank > min(in_features, out_features):
        raise ValueError(
            f"LoRA rank {rank} must be less or equal than "
            f"{min(in_features, out_features)}")

    *lead, K = x.shape
    assert K == in_features
    M = 1
    for d in lead:
        M *= d
    N = out_features

    # MXU compute dtype: bf16 by default (f32 accumulation in-kernel).
    if compute_dtype is None:
        compute_dtype = jnp.bfloat16

    x2 = x.reshape(M, K).astype(compute_dtype)

    # LoRA down projection hoisted out of the fused kernel (tiny: M x K x rank)
    # so it is not recomputed for every N tile inside the grid.
    down = jnp.dot(x2, jnp.transpose(w_down).astype(compute_dtype),
                   preferred_element_type=jnp.float32).astype(compute_dtype)

    # Small LoRA up weight: transpose (cheap, (N, rank)) and fold in the scale.
    wupT = (jnp.transpose(w_up).astype(jnp.float32)
            * jnp.float32(lora_scale)).astype(compute_dtype)         # (rank, N)

    bias = b_fc if b_fc is not None else jnp.zeros((N,), jnp.float32)
    bias = bias.astype(jnp.float32).reshape(1, N)

    # ---- tiling: pad only to (8, 128) alignment; balanced tile sizes ----
    rank_p = _round_up(max(rank, 1), 128)       # lane-dense LoRA operands
    tm, M_p = _balanced_tile(M, tm_max, 8)
    tn, N_p = _balanced_tile(N, tn_max, 128)
    tk, K_p = _balanced_tile(K, tk_max, 128)

    # Keep both TensorCores busy (v7x) when the problem fits a single tile.
    if (M_p // tm) * (N_p // tn) < 2:
        if N_p >= 2 * 128:
            tn = _round_up(_cdiv(N_p, 2), 128)
            N_p = 2 * tn
        elif M_p >= 2 * 8:
            tm = _round_up(_cdiv(M_p, 2), 8)
            M_p = 2 * tm

    def pad2(a, rows, cols):
        pr, pc = rows - a.shape[0], cols - a.shape[1]
        if pr == 0 and pc == 0:
            return a
        return jnp.pad(a, ((0, pr), (0, pc)))

    xp = pad2(x2, M_p, K_p)
    wfcp = pad2(w_fc.astype(compute_dtype), N_p, K_p)    # native (N, K) layout
    downp = pad2(down, M_p, rank_p)
    wupp = pad2(wupT, rank_p, N_p)
    bp = pad2(bias, 1, N_p)

    grid = (M_p // tm, N_p // tn, K_p // tk)

    # VMEM budget: double-buffered inputs/output + f32 accumulator scratch.
    cdt = jnp.dtype(compute_dtype).itemsize
    odt = jnp.dtype(orig_dtype).itemsize
    est = (2 * ((tm * tk + tn * tk + tm * rank_p + rank_p * tn) * cdt
                + tn * 4 + tm * tn * odt)
           + tm * tn * 4)
    vmem_limit = int(min(48 * 2**20, max(32 * 2**20, 2 * est)))
    vmem_limit = int(max(vmem_limit, est + (4 << 20)))

    out = pl.pallas_call(
        _lora_linear_kernel,
        out_shape=jax.ShapeDtypeStruct((M_p, N_p), orig_dtype),
        grid_spec=pltpu.PrefetchScalarGridSpec(
            num_scalar_prefetch=0,
            grid=grid,
            in_specs=[
                pl.BlockSpec((tm, tk), lambda i, j, k: (i, k)),       # x
                pl.BlockSpec((tn, tk), lambda i, j, k: (j, k)),       # W_fc (N,K)
                pl.BlockSpec((tm, rank_p), lambda i, j, k: (i, 0)),   # down
                pl.BlockSpec((rank_p, tn), lambda i, j, k: (0, j)),   # s*W_up^T
                pl.BlockSpec((1, tn), lambda i, j, k: (0, j)),        # bias
            ],
            out_specs=pl.BlockSpec((tm, tn), lambda i, j, k: (i, j)),
            scratch_shapes=[pltpu.VMEM((tm, tn), jnp.float32)],
        ),
        compiler_params=pltpu.CompilerParams(
            dimension_semantics=("parallel", "parallel", "arbitrary"),
            vmem_limit_bytes=vmem_limit),
    )(xp, wfcp, downp, wupp, bp)

    out = out[:M, :N]
    return out.reshape(*lead, N).astype(orig_dtype)


def _reference(x, w_fc, b_fc, w_down, w_up, lora_scale):
    """Pure-JAX f32 reference mirroring the PyTorch forward."""
    fc = jnp.einsum("...k,nk->...n", x, w_fc)
    if b_fc is not None:
        fc = fc + b_fc
    down = jnp.einsum("...k,rk->...r", x, w_down)
    lora = jnp.einsum("...r,nr->...n", down, w_up)
    return (fc + lora_scale * lora).astype(x.dtype)


if __name__ == "__main__":
    key = jax.random.PRNGKey(0)
    batch, seq, in_features, out_features, rank = 2, 8, 32, 32, 4
    lora_scale = 0.5

    k1, k2, k3, k4, k5 = jax.random.split(key, 5)
    x = jax.random.normal(k1, (batch, seq, in_features), jnp.float32)
    w_fc = 0.1 * jax.random.normal(k2, (out_features, in_features), jnp.float32)
    b_fc = 0.1 * jax.random.normal(k3, (out_features,), jnp.float32)

    # Faithful LoRALinearLayer init: down ~ Normal(std=1/rank), up = 0.
    w_down = (1.0 / rank) * jax.random.normal(k4, (rank, in_features), jnp.float32)
    w_up = jnp.zeros((out_features, rank), jnp.float32)

    # Exact f32 compute path (matches PyTorch per-branch f32 math).
    out = jax.block_until_ready(
        monkeypatch_lora_linear_pallas(x, w_fc, b_fc, w_down, w_up,
                                       lora_scale=lora_scale,
                                       compute_dtype=jnp.float32))
    assert out.shape == (batch, seq, out_features), out.shape
    ref = _reference(x, w_fc, b_fc, w_down, w_up, lora_scale)
    assert jnp.allclose(out, ref, atol=1e-5, rtol=1e-5)

    # Non-zero LoRA up weights, exact f32 path.
    w_up_nz = 0.1 * jax.random.normal(k5, (out_features, rank), jnp.float32)
    out_nz = jax.block_until_ready(
        monkeypatch_lora_linear_pallas(x, w_fc, b_fc, w_down, w_up_nz,
                                       lora_scale=lora_scale,
                                       compute_dtype=jnp.float32))
    ref_nz = _reference(x, w_fc, b_fc, w_down, w_up_nz, lora_scale)
    assert jnp.allclose(out_nz, ref_nz, atol=1e-4, rtol=1e-4)

    # Default fast path: bf16 MXU inputs with f32 accumulation.
    out_bf16 = jax.block_until_ready(
        monkeypatch_lora_linear_pallas(x, w_fc, b_fc, w_down, w_up_nz,
                                       lora_scale=lora_scale))
    assert jnp.allclose(out_bf16, ref_nz, atol=5e-2, rtol=5e-2)

    # Ragged shapes (exercise the (8,128)-only padding path).
    xr = jax.random.normal(k1, (1, 5, 40), jnp.float32)
    w_fc_r = 0.1 * jax.random.normal(k2, (24, 40), jnp.float32)
    b_fc_r = 0.1 * jax.random.normal(k3, (24,), jnp.float32)
    w_down_r = (1.0 / rank) * jax.random.normal(k4, (rank, 40), jnp.float32)
    w_up_r = 0.1 * jax.random.normal(k5, (24, rank), jnp.float32)
    out_r = jax.block_until_ready(
        monkeypatch_lora_linear_pallas(xr, w_fc_r, b_fc_r, w_down_r, w_up_r,
                                       lora_scale=lora_scale,
                                       compute_dtype=jnp.float32))
    ref_r = _reference(xr, w_fc_r, b_fc_r, w_down_r, w_up_r, lora_scale)
    assert out_r.shape == (1, 5, 24), out_r.shape
    assert jnp.allclose(out_r, ref_r, atol=1e-4, rtol=1e-4)

    # Multi-block grid (K reduction over several tiles, 2 N tiles).
    xg = jax.random.normal(k1, (2, 8, 320), jnp.float32)
    w_fc_g = 0.05 * jax.random.normal(k2, (256, 320), jnp.float32)
    b_fc_g = 0.1 * jax.random.normal(k3, (256,), jnp.float32)
    w_down_g = (1.0 / rank) * jax.random.normal(k4, (rank, 320), jnp.float32)
    w_up_g = 0.1 * jax.random.normal(k5, (256, rank), jnp.float32)
    out_g = jax.block_until_ready(
        monkeypatch_lora_linear_pallas(xg, w_fc_g, b_fc_g, w_down_g, w_up_g,
                                       lora_scale=lora_scale,
                                       compute_dtype=jnp.float32,
                                       tn_max=128, tk_max=128))
    ref_g = _reference(xg, w_fc_g, b_fc_g, w_down_g, w_up_g, lora_scale)
    assert out_g.shape == (2, 8, 256), out_g.shape
    assert jnp.allclose(out_g, ref_g, atol=1e-4, rtol=1e-4)

    print("KERNEL_OK")
</pallas_src>

<mosaic_0001>
module attributes {stable_mosaic.version = 11 : i64} {
  func.func @_lora_linear_kernel(%arg0: i32, %arg1: i32, %arg2: i32, %arg3: memref<8x128xf32, #tpu.memory_space<vmem>>, %arg4: memref<128x128xf32, #tpu.memory_space<vmem>>, %arg5: memref<8x128xf32, #tpu.memory_space<vmem>>, %arg6: memref<128x128xf32, #tpu.memory_space<vmem>>, %arg7: memref<1x128xf32, #tpu.memory_space<vmem>>, %arg8: memref<8x128xf32, #tpu.memory_space<vmem>>, %arg9: memref<8x128xf32, #tpu.memory_space<vmem>>) attributes {dimension_semantics = [#tpu.dimension_semantics<parallel>, #tpu.dimension_semantics<parallel>, #tpu.dimension_semantics<arbitrary>], iteration_bounds = array<i64: 2, 1, 1>, scalar_prefetch = 0 : i64, scratch_operands = 1 : i64, tpu.core_type = #tpu.core_type<tc>, window_params = [{transform_indices = @transform_0, window_bounds = array<i64: 8, 128>}, {transform_indices = @transform_1, window_bounds = array<i64: 128, 128>}, {transform_indices = @transform_2, window_bounds = array<i64: 8, 128>}, {transform_indices = @transform_3, window_bounds = array<i64: 128, 128>}, {transform_indices = @transform_4, window_bounds = array<i64: 1, 128>}, {transform_indices = @transform_5, window_bounds = array<i64: 8, 128>}]} {
    %c0_i32 = arith.constant 0 : i32
    %0 = arith.cmpi eq, %arg2, %c0_i32 : i32
    %1 = arith.extui %0 : i1 to i32
    %c0_i32_0 = arith.constant 0 : i32
    %2 = arith.cmpi ne, %1, %c0_i32_0 : i32
    scf.if %2 {
      %cst_10 = arith.constant 0.000000e+00 : f32
      %12 = vector.broadcast %cst_10 : f32 to vector<8x128xf32>
      %c0_11 = arith.constant 0 : index
      %c0_12 = arith.constant 0 : index
      %13 = vector.load %arg9[%c0_11, %c0_12] : memref<8x128xf32, #tpu.memory_space<vmem>>, vector<8x128xf32>
      tpu.vector_store %arg9[%c0_11, %c0_12], %12 {strides = array<i32>} : memref<8x128xf32, #tpu.memory_space<vmem>>, vector<8x128xf32>,
    } else {
    }
    %c0 = arith.constant 0 : index
    %c0_1 = arith.constant 0 : index
    %3 = vector.load %arg9[%c0, %c0_1] : memref<8x128xf32, #tpu.memory_space<vmem>>, vector<8x128xf32>
    %c0_2 = arith.constant 0 : index
    %c0_3 = arith.constant 0 : index
    %4 = vector.load %arg3[%c0_2, %c0_3] : memref<8x128xf32, #tpu.memory_space<vmem>>, vector<8x128xf32>
    %c0_4 = arith.constant 0 : index
    %c0_5 = arith.constant 0 : index
    %5 = vector.load %arg4[%c0_4, %c0_5] : memref<128x128xf32, #tpu.memory_space<vmem>>, vector<128x128xf32>
    %cst = arith.constant dense<0.000000e+00> : vector<8x128xf32>
    %6 = tpu.matmul %4, %5, %cst {dimension_numbers = #tpu.dot_dimension_numbers<[1], [1], [0], [0], [0, 0, 1, 0], [], []>} : vector<8x128xf32>, vector<128x128xf32>, vector<8x128xf32> -> vector<8x128xf32>
    %7 = arith.addf %3, %6 : vector<8x128xf32>
    %c0_6 = arith.constant 0 : index
    %c0_7 = arith.constant 0 : index
    %8 = vector.load %arg9[%c0_6, %c0_7] : memref<8x128xf32, #tpu.memory_space<vmem>>, vector<8x128xf32>
    tpu.vector_store %arg9[%c0_6, %c0_7], %7 {strides = array<i32>} : memref<8x128xf32, #tpu.memory_space<vmem>>, vector<8x128xf32>,
    %c0_i32_8 = arith.constant 0 : i32
    %9 = arith.cmpi eq, %arg2, %c0_i32_8 : i32
    %10 = arith.extui %9 : i1 to i32
    %c0_i32_9 = arith.constant 0 : i32
    %11 = arith.cmpi ne, %10, %c0_i32_9 : i32
    scf.if %11 {
      %c0_10 = arith.constant 0 : index
      %c0_11 = arith.constant 0 : index
      %12 = vector.load %arg5[%c0_10, %c0_11] : memref<8x128xf32, #tpu.memory_space<vmem>>, vector<8x128xf32>
      %c0_12 = arith.constant 0 : index
      %c0_13 = arith.constant 0 : index
      %13 = vector.load %arg6[%c0_12, %c0_13] : memref<128x128xf32, #tpu.memory_space<vmem>>, vector<128x128xf32>
      %cst_14 = arith.constant dense<0.000000e+00> : vector<8x128xf32>
      %14 = tpu.matmul %12, %13, %cst_14 {dimension_numbers = #tpu.dot_dimension_numbers<[1], [0], [0], [1], [0, 0, 1, 1], [], []>} : vector<8x128xf32>, vector<128x128xf32>, vector<8x128xf32> -> vector<8x128xf32>
      %c0_15 = arith.constant 0 : index
      %c0_16 = arith.constant 0 : index
      %15 = vector.load %arg9[%c0_15, %c0_16] : memref<8x128xf32, #tpu.memory_space<vmem>>, vector<8x128xf32>
      %16 = arith.addf %15, %14 : vector<8x128xf32>
      %c0_17 = arith.constant 0 : index
      %c0_18 = arith.constant 0 : index
      %17 = vector.load %arg7[%c0_17, %c0_18] : memref<1x128xf32, #tpu.memory_space<vmem>>, vector<1x128xf32>
      %18 = vector.broadcast %17 : vector<1x128xf32> to vector<8x128xf32>
      %19 = arith.addf %16, %18 : vector<8x128xf32>
      %c0_19 = arith.constant 0 : index
      %c0_20 = arith.constant 0 : index
      %20 = vector.load %arg8[%c0_19, %c0_20] : memref<8x128xf32, #tpu.memory_space<vmem>>, vector<8x128xf32>
      tpu.vector_store %arg8[%c0_19, %c0_20], %19 {strides = array<i32>} : memref<8x128xf32, #tpu.memory_space<vmem>>, vector<8x128xf32>,
    } else {
    }
    return
  }
  func.func @transform_0(%arg0: i32, %arg1: i32, %arg2: i32) -> (i32, i32) {
    %c0_i32 = arith.constant 0 : i32
    return %arg0, %arg2 : i32, i32
  }
  func.func @transform_1(%arg0: i32, %arg1: i32, %arg2: i32) -> (i32, i32) {
    %c0_i32 = arith.constant 0 : i32
    return %arg1, %arg2 : i32, i32
  }
  func.func @transform_2(%arg0: i32, %arg1: i32, %arg2: i32) -> (i32, i32) {
    %c0_i32 = arith.constant 0 : i32
    %c0_i32_0 = arith.constant 0 : i32
    return %arg0, %c0_i32 : i32, i32
  }
  func.func @transform_3(%arg0: i32, %arg1: i32, %arg2: i32) -> (i32, i32) {
    %c0_i32 = arith.constant 0 : i32
    %c0_i32_0 = arith.constant 0 : i32
    return %c0_i32, %arg1 : i32, i32
  }
  func.func @transform_4(%arg0: i32, %arg1: i32, %arg2: i32) -> (i32, i32) {
    %c0_i32 = arith.constant 0 : i32
    %c0_i32_0 = arith.constant 0 : i32
    return %c0_i32, %arg1 : i32, i32
  }
  func.func @transform_5(%arg0: i32, %arg1: i32, %arg2: i32) -> (i32, i32) {
    %c0_i32 = arith.constant 0 : i32
    return %arg0, %arg1 : i32, i32
  }
}

</mosaic_0001>

<bundles_post_ra>
// kernel: tpu_custom_call.1
= control target key start
LH: loop header
LB: loop body
LE: loop exit
PB: predicated region body
PF: predicated region fallthrough
CT: control target
= control target key end

     0   :  { %s1174_s0 = inlined_call_operand.hbm [shape: f32[16,128], index: 0, kind: input, shape index: {}]   ;;  %s1175_s1 = inlined_call_operand.hbm [shape: f32[128,128], index: 1, kind: input, shape index: {}]   ;;  %s1176_s2 = inlined_call_operand.hbm [shape: f32[16,128], index: 2, kind: input, shape index: {}]   ;;  %s1177_s3 = inlined_call_operand.hbm [shape: f32[128,128], index: 3, kind: input, shape index: {}]   ;;  %s1178_s4 = inlined_call_operand.vmem [shape: f32[1,128], index: 4, kind: input, shape index: {}]   ;;  %s1179_s5 = inlined_call_operand.hbm [shape: f32[16,128], index: 5, kind: output, shape index: {}]  }
   0x1   :  { %1187 = sst [smem:[#allocation21_spill]] %s1174_s0 }
   0x2   :  { %1188 = sst [smem:[#allocation22_spill]] %s1175_s1 }
   0x3   :  { %10 = vsyncpa [#allocation4], 0 }
   0x4   :  { %12 = vsyncpa [#allocation4 + $0x1], 0 }
   0x5   :  { %13 = vsyncpa [#allocation7], 0 }
   0x6   :  { %14 = vsyncpa [#allocation5], 0 }
   0x7   :  { %16 = vsyncpa [#allocation5 + $0x1], 0  ;;  %s980_s18 = smov 0   ;;  %s982_s19 = smov 0  }
   0x8   :  { %s984_s20 = smov 0   ;;  %s986_s21 = smov 0  }
   0x9   :  { %s988_s22 = smov 0   ;;  %s990_s23 = smov 0  }
   0xa LB: > { %1189 = sst [smem:[#allocation16_spill]] %s932_s20  ;;  %s1011_s24 = sadd.s32 4294967295, %s944_s23   ;;  %s944_s23 = sphi %s990_s23, %s22_s23   ;;  %s940_s22 = sphi %s988_s22, %s1209_s22   ;;  %s936_s21 = sphi %s986_s21, %s1208_s21   ;;  %s932_s20 = sphi %s984_s20, %s1212_s20   ;;  %s928_s19 = sphi %s982_s19, %s1211_s19   ;;  %s924_s18 = sphi %s980_s18, %s1210_s18  }
   0xb   : > { %1190 = sst [smem:[#allocation17_spill]] %s940_s22  ;;  %p620_p0 = scmp.ge.s32.totalorder %s944_s23, 1 }
   0xc   : > { %1191 = sst [smem:[#allocation18_spill]] %s944_s23  ;;  %p64_p1 = scmp.eq.s32.totalorder %s1011_s24, 0 }
   0xd   : > { %p208_p2 = scmp.lt.s32.totalorder %s944_s23, 3  ;;  %s1192_s1 = sld [smem:[#allocation22_spill]] }
   0xe   : > { %s946_s29 = smov [#allocation6]   ;;  %p624_p6 = scmp.ge.s32.totalorder %s944_s23, 2 }
   0xf   : > { %p1019_p3 = pnand %p620_p0, %p208_p2  ;;  %s225_s30 = sshll.u32 %s946_s29, 4  ;;  %s226_s30 = int_to_ptr.vmem [resolvable:$true] %s225_s30 }
  0x10   : > { %s1180_s7 = smov 128   ;;  %s1181_s8 = smov 8  }
  0x11   : > { %p653_p4 = pneg %p1019_p3  ;;  %s619_s9 = sadd.s32 4294967294, %s944_s23  }
  0x12   : > { %s41_s10 = sadd.s32 1, %s940_s22  ;;  %s50_s11 = sadd.s32 1, %s932_s20 }
  0x13   : > { %s223_s27 = sshll.u32 %s1192_s1, 4  ;;  %p1027_p5 = pnand %p653_p4, %p64_p1  ;;  %s224_s27 = int_to_ptr.hbm [resolvable:$true] %s223_s27 }
  0x14   : > { %p43_p7 = scmp.ge.s32.totalorder %s41_s10, 2  ;;  %p57_p8 = scmp.ne.s32.totalorder %s932_s20, %s928_s19 }
  0x15   : > { %656 = dma.hbm_to_vmem [thread:$0]  (!%p1027_p5), %s224_s27, 2048, %s226_s30, [#allocation7], %s1180_s7, %s1180_s7, %s1181_s8  }
  0x16   : > { %p58_p9 = scmp.eq.s32.totalorder %s944_s23, 0  ;;  %p63_p10 = scmp.ne.s32.totalorder %s928_s19, %s924_s18 }
  0x17   : > { %s1214_s10 = smov (%p43_p7, %s41_s10), 0  ;;  %p195_p13 = scmp.eq.s32.totalorder %s1011_s24, 1 }
  0x18   : > { %1195 = sst [smem:[#allocation19_spill]] %s1214_s10  ;;  %p1047_p11 = por %p58_p9, %p57_p8 }
  0x19   : > { %p1053_p12 = por %p64_p1, %p63_p10  ;;  %s45_s14 = ssub.s32 %s940_s22, %s1214_s10 }
  0x1a   : > { %p48_p0 = scmp.eq.s32.totalorder %s45_s14, 0  ;;  %p201_p2 = scmp.eq.s32.totalorder %s619_s9, 1 }
  0x1b   : > { %p1060_p4 = por %p195_p13, %p57_p8  ;;  %p673_p7 = scmp.lt.s32.totalorder %s944_s23, 2 }
  0x1c   : > { %s1066_s16 = scalar_select %p48_p0, %s932_s20, %s50_s11  }
  0x1d   : > { %p1068_p9 = por %p201_p2, %p63_p10  ;;  %s261_s25 = sand.u32 1, %s944_s23  }
  0x1e   : > { %1199 = sst [smem:[#allocation20_spill]] %s1066_s16  ;;  %s263_s26 = sand.u32 1, %s932_s20  }
  0x1f   : > { %s625_s27 = sshll.u32 %s263_s26, 3  ;;  %s626_s29 = sshll.u32 %s940_s22, 3 }
  0x20   : > { %s1201_s0 = sld [smem:[#allocation21_spill]]  ;;  %s265_s8 = scalar_lea.vmem [#allocation3], %s625_s27 }
  0x21   : > { %s274_s1 = sshll.u32 %s265_s8, 4  ;;  %p1082_p8 = pnand %p673_p7, %p1047_p11  ;;  %s275_s1 = int_to_ptr.vmem [resolvable:$true] %s274_s1 }
  0x22   : > { %s289_s26 = scalar_lea.hbm %s1176_s2, %s626_s29  ;;  %s262_s8 = scalar_lea.sflag [#allocation4], %s261_s25 }
  0x23   : > { %s291_s12 = sshll.u32 %s289_s26, 4  ;;  %s285_s20 = scalar_lea.vmem [#allocation8], %s625_s27  ;;  %s292_s12 = int_to_ptr.hbm [resolvable:$true] %s291_s12 }
  0x24   : > { %s293_s23 = sshll.u32 %s285_s20, 4  ;;  %s1203_s10 = smov 8   ;;  %s294_s23 = int_to_ptr.vmem [resolvable:$true] %s293_s23 }
  0x25   : > { %s1204_s16 = smov 128  }
  0x26   : > { %s270_s7 = scalar_lea.hbm %s1201_s0, %s626_s29  ;;  %s949_s0 = smov [#allocation9]  }
  0x27   : > { %s272_s9 = sshll.u32 %s270_s7, 4  ;;  %s239_s7 = sshll.u32 %s1177_s3, 4  ;;  %s273_s9 = int_to_ptr.hbm [resolvable:$true] %s272_s9  ;;  %s240_s7 = int_to_ptr.hbm [resolvable:$true] %s239_s7 }
  0x28   : > { %663 = dma.hbm_to_vmem [thread:$0]  (!%p1082_p8), %s273_s9, 128, %s275_s1, %s262_s8  }
  0x29   : > { %s241_s22 = sshll.u32 %s949_s0, 4  ;;  %302 = sbr.rel (%p1019_p3) target bundleno = 251 (0xfb), region = 40  ;;  %s242_s22 = int_to_ptr.vmem [resolvable:$true] %s241_s22 }
  0x2a   : > { %659 = dma.hbm_to_vmem [thread:$0]  (!%p1027_p5), %s240_s7, 2048, %s242_s22, [#allocation7], %s1204_s16, %s1204_s16, %s1203_s10  }
  0x2b   : > { %666 = dma.hbm_to_vmem [thread:$0]  (!%p1082_p8), %s292_s12, 128, %s294_s23, %s262_s8  }
  0x2c   : > { %s304_s0 = sand.u32 (!%p1019_p3), 1, %s1011_s24   ;;  %s306_s1 = sand.u32 (!%p1019_p3), 1, %s928_s19  }
  0x2d   : > { %s1107_s25 = sshll.u32 (!%p1019_p3), %s306_s1, 3  ;;  %s305_s20 = scalar_lea.sflag (!%p1019_p3), [#allocation4], %s304_s0 }
  0x2e   : > { %s308_s6 = scalar_lea.vmem [#allocation3], %s1107_s25 }
  0x2f   : > { %903 = dma.done.wait (%p1053_p12), %s305_s20, 128  }
  0x30   : > { %905 = vsyncadd (%p1053_p12), %s305_s20, 4294967168 }
  0x31   : > { %907 = dma.done.wait (%p64_p1), [#allocation7], 2048  }
  0x32   : > { %909 = vsyncadd (%p64_p1), [#allocation7], 4294965248  ;;  %s323_s22 = scalar_lea.vmem [#allocation8], %s1107_s25 }
  0x33   : > { %911 = dma.done.wait (%p1053_p12), %s305_s20, 128  }
  0x34   : > { %913 = vsyncadd (%p1053_p12), %s305_s20, 4294967168 }
  0x35   : > { %915 = dma.done.wait (%p64_p1), [#allocation7], 2048  }
  0x36   : > { %917 = vsyncadd (%p64_p1), [#allocation7], 4294965248  ;;  %v390_v0 = vld [vmem:[#allocation6 + $0x78] sm:$0xff]  ;;  %v389_v1 = vld [vmem:[#allocation6 + $0x70] sm:$0xff]  ;;  %s636_s23 = sshll.u32 %s936_s21, 3  ;;  %s363_s9 = scalar_lea.vmem [#allocation10], %s1107_s25 }
  0x37   : > { %391 = vmatpush.xpose.msra.mxu0 %v390_v0  ;;  %v432_v2 = vld [vmem:[#allocation9 + $0x78] sm:$0xff]  ;;  %v431_v3 = vld [vmem:[#allocation9 + $0x70] sm:$0xff]  ;;  %v430_v4 = vld [vmem:[#allocation9 + $0x68] sm:$0xff]  ;;  %s473_s13 = scalar_lea.hbm %s1179_s5, %s636_s23  ;;  %s475_s11 = sshll.u32 %s363_s9, 4  ;;  %s476_s11 = int_to_ptr.vmem [resolvable:$true] %s475_s11 }
  0x38   : > { %433 = vmatpush.msra.mxu1 %v432_v2  ;;  %v388_v5 = vld [vmem:[#allocation6 + $0x68] sm:$0xff]  ;;  %v429_v6 = vld [vmem:[#allocation9 + $0x60] sm:$0xff]  ;;  %v387_v8 = vld [vmem:[#allocation6 + $0x60] sm:$0xff]  ;;  %s477_s26 = sshll.u32 %s473_s13, 4  ;;  %s462_s21 = scalar_lea.sflag [#allocation5], %s306_s1  ;;  %s478_s26 = int_to_ptr.hbm [resolvable:$true] %s477_s26 }
  0x39   : > { %v428_v7 = vld [vmem:[#allocation9 + $0x58] sm:$0xff]  ;;  %v427_v9 = vld [vmem:[#allocation9 + $0x50] sm:$0xff]  ;;  %v426_v10 = vld [vmem:[#allocation9 + $0x48] sm:$0xff]  ;;  %s864_s30 = sshra.s32 %s478_s26, 4  ;;  %s870_s12 = scalar_lea.hbm %s1179_s5, 16  ;;  %s865_s30 = int_to_ptr.hbm [resolvable:$true] %s864_s30 }
  0x3a   : > { %434 = vmatpush.msra.mxu1 %v431_v3  ;;  %v386_v11 = vld [vmem:[#allocation6 + $0x58] sm:$0xff]  ;;  %v425_v12 = vld [vmem:[#allocation9 + $0x40] sm:$0xff]  ;;  %v424_v13 = vld [vmem:[#allocation9 + $0x38] sm:$0xff]  ;;  %s866_s14 = scalar_lea.hbm %s865_s30, 8  ;;  %p871_p10 = scmp.lt.s32.totalorder %s865_s30, %s1179_s5 }
  0x3b   : > { %392 = vmatpush.xpose.msra.mxu0 %v389_v1  ;;  %v385_v14 = vld [vmem:[#allocation6 + $0x50] sm:$0xff]  ;;  %v423_v15 = vld [vmem:[#allocation9 + $0x30] sm:$0xff]  ;;  %v422_v16 = vld [vmem:[#allocation9 + $0x28] sm:$0xff]  ;;  %p867_p1 = scmp.ne.s32.totalorder %s865_s30, %s866_s14  ;;  %p872_p11 = scmp.lt.s32.totalorder %s870_s12, %s866_s14 }
  0x3c   : > { %435 = vmatpush.msra.mxu1 %v430_v4  ;;  %v384_v17 = vld [vmem:[#allocation6 + $0x48] sm:$0xff]  ;;  %v421_v18 = vld [vmem:[#allocation9 + $0x20] sm:$0xff]  ;;  %v383_v20 = vld [vmem:[#allocation6 + $0x40] sm:$0xff] }
  0x3d   : > { %v420_v19 = vld [vmem:[#allocation9 + $0x18] sm:$0xff]  ;;  %v419_v21 = vld [vmem:[#allocation9 + $0x10] sm:$0xff]  ;;  %v418_v22 = vld [vmem:[#allocation9 + $0x8] sm:$0xff]  ;;  %p868_p3 = pnand %p867_p1, %p1060_p4  ;;  %p873_p12 = por %p872_p11, %p871_p10 }
  0x3e   : > { %436 = vmatpush.msra.mxu1 %v429_v6  ;;  %v382_v23 = vld [vmem:[#allocation6 + $0x38] sm:$0xff]  ;;  %v417_v24 = vld [vmem:[#allocation9] sm:$0xff]  ;;  %v416_v25 = vld [vmem:[%s323_s22] sm:$0xff] }
  0x3f   : > { %393 = vmatpush.xpose.msra.mxu0 %v388_v5  ;;  %v381_v26 = vld [vmem:[#allocation6 + $0x30] sm:$0xff]  ;;  %v380_v27 = vld [vmem:[#allocation6 + $0x28] sm:$0xff]  ;;  %v379_v28 = vld [vmem:[#allocation6 + $0x20] sm:$0xff]  ;;  %p869_p5 = pneg %p868_p3 }
  0x40   : > { %437 = vmatpush.msra.mxu1 %v428_v7  ;;  %v378_v29 = vld [vmem:[#allocation6 + $0x18] sm:$0xff]  ;;  %v377_v30 = vld [vmem:[#allocation6 + $0x10] sm:$0xff]  ;;  %v376_v31 = vld [vmem:[#allocation6 + $0x8] sm:$0xff] }
  0x41   : > { %v375_v32 = vld [vmem:[#allocation6] sm:$0xff]  ;;  %v374_v33 = vld [vmem:[%s308_s6] sm:$0xff]  ;;  %p874_p13 = pnand %p873_p12, %p869_p5 }
  0x42   : > { %438 = vmatpush.msra.mxu1 %v427_v9  ;;  %v729_v35 = vld [vmem:[%s1178_s4] ss:$0 sm:$0xff] }
  0x43   : > { %394 = vmatpush.xpose.msra.mxu0 %v387_v8 }
  0x44   : > { %439 = vmatpush.msra.mxu1 %v426_v10 }
  0x46   : > { %440 = vmatpush.msra.mxu1 %v425_v12 }
  0x47   : > { %395 = vmatpush.xpose.msra.mxu0 %v386_v11 }
  0x48   : > { %441 = vmatpush.msra.mxu1 %v424_v13 }
  0x4a   : > { %442 = vmatpush.msra.mxu1 %v423_v15 }
  0x4b   : > { %396 = vmatpush.xpose.msra.mxu0 %v385_v14 }
  0x4c   : > { %443 = vmatpush.msra.mxu1 %v422_v16 }
  0x4e   : > { %444 = vmatpush.msra.mxu1 %v421_v18 }
  0x4f   : > { %397 = vmatpush.xpose.msra.mxu0 %v384_v17 }
  0x50   : > { %445 = vmatpush.msra.mxu1 %v420_v19 }
  0x52   : > { %446 = vmatpush.msra.mxu1 %v419_v21 }
  0x53   : > { %398 = vmatpush.xpose.msra.mxu0 %v383_v20 }
  0x54   : > { %447 = vmatpush.msra.mxu1 %v418_v22 }
  0x56   : > { %448 = vmatpush.msra.mxu1 %v417_v24 }
  0x57   : > { %399 = vmatpush.xpose.msra.mxu0 %v382_v23  ;;  %449 = vmatmul.f32.vlgmr.msra.gmra.mxu1 %v416_v25 }
  0x5b   : > { %400 = vmatpush.xpose.msra.mxu0 %v381_v26 }
  0x5f   : > { %401 = vmatpush.xpose.msra.mxu0 %v380_v27 }
  0x63   : > { %402 = vmatpush.xpose.msra.mxu0 %v379_v28 }
  0x67   : > { %403 = vmatpush.xpose.msra.mxu0 %v378_v29 }
  0x6b   : > { %404 = vmatpush.xpose.msra.mxu0 %v377_v30 }
  0x6f   : > { %405 = vmatpush.xpose.msra.mxu0 %v376_v31 }
  0x73   : > { %406 = vmatpush.xpose.msra.mxu0 %v375_v32 }
  0x76   : > { %407 = vmatmul.f32.vlgmr.msra.gmra.mxu0 %v374_v33 }
  0xd4   : > { %v450_v34 = vpop.f32.mrf.mxu1 }
  0xf3   : > { %v408_v36 = vpop.f32.mrf.mxu0 }
  0xf4   : > { %v454_v37 = vadd.f32 %v450_v34, %v408_v36 }
  0xf6   : > { %v459_v38 = vadd.f32 %v729_v35, %v454_v37 }
  0xf8   : > { %460 = vst [vmem:[%s363_s9] sm:$0xff] %v459_v38 }
  0xf9   : > { %877 = shalt.err (!%p874_p13)
}
  0xfa   : > { %651 = dma.vmem_to_hbm [thread:$0]  (%p1060_p4), %s476_s11, 128, %s478_s26, %s462_s21  }
  0xfb PF: > { %s1205_s0 = sld [smem:[#allocation18_spill]]  ;;  %s489_s1 = sand.u32 1, %s924_s18  }
  0xfc   : > { %p668_p0 = pnand %p624_p6, %p1068_p9  ;;  %s490_s25 = scalar_lea.sflag [#allocation5], %s489_s1 }
  0xfe   : > { %p669_p2 = pneg %p668_p0 }
 0x100   : > { %919 = dma.done.wait (%p669_p2), %s490_s25, 128  }
 0x101   : > { %921 = vsyncadd (%p669_p2), %s490_s25, 4294967168  ;;  %s22_s23 = sadd.s32 1, %s1205_s0   ;;  %s1206_s20 = sld [smem:[#allocation16_spill]] }
 0x102   : > { %p19_p7 = scmp.ge.s32.totalorder %s22_s23, 4   ;;  %s1207_s6 = sld [smem:[#allocation20_spill]] }
 0x103   : > { %s1208_s21 = sld [smem:[#allocation17_spill]]  ;;  %s1210_s18 = smov %s928_s19 }
 0x104   : > { %s1209_s22 = sld [smem:[#allocation19_spill]]  ;;  %21 = sbr.rel (!%p19_p7) target bundleno = 10 (0xa), region = 117 }
 0x107   : > { %s1211_s19 = smov %s1206_s20 }
 0x108   : > { %s1212_s20 = smov %s1207_s6 }
 0x109   :  { %496 = vsyncpa [#allocation4], 1 }
 0x10a   :  { %498 = vsyncpa [#allocation4 + $0x1], 1 }
 0x10b   :  { %499 = vsyncpa [#allocation7], 1 }
 0x10c   :  { %500 = vsyncpa [#allocation5], 1 }
 0x10d   :  { %502 = vsyncpa [#allocation5 + $0x1], 1 }

</bundles_post_ra>
